<compile_context>
chip_gen: v6e
topology: v6e:2x2x1
jax: 0.10.0
libtpu: 0.0.40
codegen_flags: <defaults>
</compile_context>

<pallas_src>
import numpy as np
import jax
import jax.numpy as jnp
from jax import lax
from jax.experimental import pallas as pl
from jax.experimental.pallas import tpu as pltpu


def _diffusion_kernel(aux_ref, wblk_ref, x0_ref, noise_ref, out_ref):
    """One grid step handles `rb` rows (rows = flattened (batch, channel)).

    aux   : (rb, 3) VMEM f32 -- columns [sqrt_ab[t], sqrt_1m_ab[t], temb+bias]
    wblk  : (rb, rb) VMEM    -- block-diagonal kron(I, w) 1x1-conv weight
    x0    : (rb, S) VMEM
    noise : (rb, S) VMEM
    out   : (rb, S) VMEM     -- elementwise MSE (reduction='none')
    """
    sa = aux_ref[:, 0:1]            # (rb, 1) lane-broadcast coefficients
    soma = aux_ref[:, 1:2]          # (rb, 1)
    temb = aux_ref[:, 2:3]          # (rb, 1)

    x0 = x0_ref[...]                # (rb, S)
    noise = noise_ref[...]          # (rb, S)

    # Forward diffusion: x_t = sqrt(ab_t) * x_0 + sqrt(1 - ab_t) * noise
    x_t = sa * x0 + soma * noise    # two full-tile vmuls + one vadd (VPU)

    # TODO(synk): the real denoiser (`self.model`) is an arbitrary nn.Module;
    # a deterministic 1x1-conv + time-embedding stand-in is used here.  The
    # channel mix is one small MXU matmul against the block-diagonal weight.
    pred = jnp.dot(wblk_ref[...], x_t,
                   preferred_element_type=jnp.float32,
                   precision=lax.Precision.HIGHEST) + temb

    # F.mse_loss(pred, noise, reduction='none')
    diff = pred - noise
    out_ref[...] = diff * diff


def _choose_row_block(R, S, C, itemsize=4, target_bytes=2 << 20):
    """Rows per grid step: a divisor of R, multiple of C (so the block-diagonal
    weight tiles cleanly), sublane-aligned unless it spans all rows, and sized
    so each (rb, S) block stays around <=2 MiB (keeps the DMA/compute pipeline
    running and fits v7x's 64 MiB VMEM with double-buffered in/out blocks)."""
    if R * S * itemsize <= target_bytes and R * R * itemsize <= target_bytes:
        return R
    for rb in range(R, 0, -1):
        if R % rb or rb % C:
            continue
        if rb != R and rb % 8:
            continue
        if rb * S * itemsize <= target_bytes and rb * rb * itemsize <= target_bytes:
            return rb
    return R


def gaussian_diffusion_trainer_loss(x0_nchw, t, noise_nchw,
                                    sqrt_alphas_bar, sqrt_one_minus_alphas_bar,
                                    w, bias, temb_table):
    B, C, H, W = x0_nchw.shape
    S = H * W
    R = B * C

    x0 = x0_nchw.reshape(R, S).astype(jnp.float32)
    noise = noise_nchw.reshape(R, S).astype(jnp.float32)

    # extract(v, t, x_shape): per-batch coefficient gather (glue in JAX),
    # replicated per channel so it lines up with the (B*C, S) row layout.
    sa = jnp.repeat(sqrt_alphas_bar[t].astype(jnp.float32), C)              # (R,)
    soma = jnp.repeat(sqrt_one_minus_alphas_bar[t].astype(jnp.float32), C)  # (R,)
    # Time embedding + conv bias of the stand-in denoiser, one value per row.
    temb = (temb_table[t] + bias[None, :]).astype(jnp.float32).reshape(R)   # (R,)
    aux = jnp.stack([sa, soma, temb], axis=1)                               # (R, 3)

    rb = _choose_row_block(R, S, C)
    grid = (R // rb,)

    # Block-diagonal 1x1-conv weight shared by every row block:
    # pred[b*C + o] = sum_c w[o, c] * x_t[b*C + c].
    wblk = jnp.kron(jnp.eye(rb // C, dtype=jnp.float32),
                    w.astype(jnp.float32))                                  # (rb, rb)

    out = pl.pallas_call(
        _diffusion_kernel,
        out_shape=jax.ShapeDtypeStruct((R, S), jnp.float32),
        grid_spec=pltpu.PrefetchScalarGridSpec(
            num_scalar_prefetch=0,
            grid=grid,
            in_specs=[
                pl.BlockSpec((rb, 3), lambda g: (g, 0)),     # aux coefficients
                pl.BlockSpec((rb, rb), lambda g: (0, 0)),    # block-diag weight
                pl.BlockSpec((rb, S), lambda g: (g, 0)),     # x0
                pl.BlockSpec((rb, S), lambda g: (g, 0)),     # noise
            ],
            out_specs=pl.BlockSpec((rb, S), lambda g: (g, 0)),
        ),
        compiler_params=pltpu.CompilerParams(
            dimension_semantics=("parallel",)),
    )(aux, wblk, x0, noise)

    return out.reshape(B, C, H, W)


if __name__ == "__main__":
    B, C, H, W, T = 2, 4, 16, 16, 8

    # Diffusion schedule (deterministic, mirrors __init__ buffers)
    betas = np.linspace(1e-4, 0.02, T, dtype=np.float64)
    alphas = 1.0 - betas
    alphas_bar = np.cumprod(alphas)
    sqrt_alphas_bar = jnp.asarray(np.sqrt(alphas_bar), jnp.float32)
    sqrt_one_minus_alphas_bar = jnp.asarray(np.sqrt(1.0 - alphas_bar), jnp.float32)

    # Deterministic inputs / parameters (torch.randint / torch.randn_like
    # become wrapper-side jax.random draws).
    key = jax.random.PRNGKey(0)
    k_x, k_t, k_n, k_w, k_b, k_e = jax.random.split(key, 6)
    x0 = jax.random.normal(k_x, (B, C, H, W), jnp.float32)
    t = jax.random.randint(k_t, (B,), 0, T)                         # torch.randint(T, (B,))
    noise = jax.random.normal(k_n, (B, C, H, W), jnp.float32)       # torch.randn_like(x_0)
    w = 0.1 * jax.random.normal(k_w, (C, C), jnp.float32)           # 1x1 conv weight
    bias = 0.1 * jax.random.normal(k_b, (C,), jnp.float32)          # conv bias
    temb_table = 0.1 * jax.random.normal(k_e, (T, C), jnp.float32)  # time embedding

    loss = gaussian_diffusion_trainer_loss(
        x0, t, noise, sqrt_alphas_bar, sqrt_one_minus_alphas_bar, w, bias, temb_table)
    loss = jax.block_until_ready(loss)

    # Pure-JAX reference (same math, NCHW)
    sa_r = sqrt_alphas_bar[t].reshape(B, 1, 1, 1)
    soma_r = sqrt_one_minus_alphas_bar[t].reshape(B, 1, 1, 1)
    x_t_r = sa_r * x0 + soma_r * noise
    pred_r = jnp.einsum("oc,bchw->bohw", w, x_t_r) \
        + (temb_table[t] + bias[None, :])[:, :, None, None]
    ref = (pred_r - noise) ** 2
    np.testing.assert_allclose(np.asarray(loss), np.asarray(ref), rtol=1e-5, atol=1e-5)

    assert loss.shape == (B, C, H, W) and loss.dtype == jnp.float32
    print("KERNEL_OK")
</pallas_src>

<mosaic_0001>
module attributes {stable_mosaic.version = 11 : i64} {
  func.func @_diffusion_kernel(%arg0: i32, %arg1: memref<8x3xf32, #tpu.memory_space<vmem>>, %arg2: memref<8x8xf32, #tpu.memory_space<vmem>>, %arg3: memref<8x256xf32, #tpu.memory_space<vmem>>, %arg4: memref<8x256xf32, #tpu.memory_space<vmem>>, %arg5: memref<8x256xf32, #tpu.memory_space<vmem>>) attributes {dimension_semantics = [#tpu.dimension_semantics<parallel>], iteration_bounds = array<i64: 1>, scalar_prefetch = 0 : i64, scratch_operands = 0 : i64, tpu.core_type = #tpu.core_type<tc>, window_params = [{transform_indices = @transform_0, window_bounds = array<i64: 8, 3>}, {pipeline_mode = #tpu.pipeline_mode<synchronous>, transform_indices = @transform_1, window_bounds = array<i64: 8, 8>}, {transform_indices = @transform_2, window_bounds = array<i64: 8, 256>}, {transform_indices = @transform_3, window_bounds = array<i64: 8, 256>}, {transform_indices = @transform_4, window_bounds = array<i64: 8, 256>}]} {
    %c0 = arith.constant 0 : index
    %c0_0 = arith.constant 0 : index
    %0 = vector.load %arg1[%c0, %c0_0] : memref<8x3xf32, #tpu.memory_space<vmem>>, vector<8x1xf32>
    %c0_1 = arith.constant 0 : index
    %c1 = arith.constant 1 : index
    %1 = vector.load %arg1[%c0_1, %c1] : memref<8x3xf32, #tpu.memory_space<vmem>>, vector<8x1xf32>
    %c0_2 = arith.constant 0 : index
    %c2 = arith.constant 2 : index
    %2 = vector.load %arg1[%c0_2, %c2] : memref<8x3xf32, #tpu.memory_space<vmem>>, vector<8x1xf32>
    %c0_3 = arith.constant 0 : index
    %c0_4 = arith.constant 0 : index
    %3 = vector.load %arg3[%c0_3, %c0_4] : memref<8x256xf32, #tpu.memory_space<vmem>>, vector<8x256xf32>
    %c0_5 = arith.constant 0 : index
    %c0_6 = arith.constant 0 : index
    %4 = vector.load %arg4[%c0_5, %c0_6] : memref<8x256xf32, #tpu.memory_space<vmem>>, vector<8x256xf32>
    %5 = vector.broadcast %0 : vector<8x1xf32> to vector<8x256xf32>
    %6 = arith.mulf %5, %3 : vector<8x256xf32>
    %7 = vector.broadcast %1 : vector<8x1xf32> to vector<8x256xf32>
    %8 = arith.mulf %7, %4 : vector<8x256xf32>
    %9 = arith.addf %6, %8 : vector<8x256xf32>
    %c0_7 = arith.constant 0 : index
    %c0_8 = arith.constant 0 : index
    %10 = vector.load %arg2[%c0_7, %c0_8] : memref<8x8xf32, #tpu.memory_space<vmem>>, vector<8x8xf32>
    %cst = arith.constant dense<0.000000e+00> : vector<8x256xf32>
    %11 = tpu.matmul %10, %9, %cst {dimension_numbers = #tpu.dot_dimension_numbers<[1], [0], [0], [1], [0, 0, 1, 1], [], []>, precision = #tpu.contract_precision<fp32>} : vector<8x8xf32>, vector<8x256xf32>, vector<8x256xf32> -> vector<8x256xf32>
    %12 = vector.broadcast %2 : vector<8x1xf32> to vector<8x256xf32>
    %13 = arith.addf %11, %12 : vector<8x256xf32>
    %14 = arith.subf %13, %4 : vector<8x256xf32>
    %15 = arith.mulf %14, %14 : vector<8x256xf32>
    %c0_9 = arith.constant 0 : index
    %c0_10 = arith.constant 0 : index
    %16 = vector.load %arg5[%c0_9, %c0_10] : memref<8x256xf32, #tpu.memory_space<vmem>>, vector<8x256xf32>
    tpu.vector_store %arg5[%c0_9, %c0_10], %15 {strides = array<i32>} : memref<8x256xf32, #tpu.memory_space<vmem>>, vector<8x256xf32>,
    return
  }
  func.func @transform_0(%arg0: i32) -> (i32, i32) {
    %c0_i32 = arith.constant 0 : i32
    %c0_i32_0 = arith.constant 0 : i32
    return %arg0, %c0_i32 : i32, i32
  }
  func.func @transform_1(%arg0: i32) -> (i32, i32) {
    %c0_i32 = arith.constant 0 : i32
    %c0_i32_0 = arith.constant 0 : i32
    %c0_i32_1 = arith.constant 0 : i32
    return %c0_i32, %c0_i32_0 : i32, i32
  }
  func.func @transform_2(%arg0: i32) -> (i32, i32) {
    %c0_i32 = arith.constant 0 : i32
    %c0_i32_0 = arith.constant 0 : i32
    return %arg0, %c0_i32 : i32, i32
  }
  func.func @transform_3(%arg0: i32) -> (i32, i32) {
    %c0_i32 = arith.constant 0 : i32
    %c0_i32_0 = arith.constant 0 : i32
    return %arg0, %c0_i32 : i32, i32
  }
  func.func @transform_4(%arg0: i32) -> (i32, i32) {
    %c0_i32 = arith.constant 0 : i32
    %c0_i32_0 = arith.constant 0 : i32
    return %arg0, %c0_i32 : i32, i32
  }
}

</mosaic_0001>

<bundles_post_ra>
// kernel: tpu_custom_call.1
= control target key start
LH: loop header
LB: loop body
LE: loop exit
PB: predicated region body
PF: predicated region fallthrough
CT: control target
= control target key end

     0   :  { %9 = vsyncpa [#allocation3], 0  ;;  %s693_s0 = inlined_call_operand.vmem [shape: f32[8,3], index: 0, kind: input, shape index: {}]   ;;  %s694_s1 = inlined_call_operand.hbm [shape: f32[8,8], index: 1, kind: input, shape index: {}]   ;;  %s695_s2 = inlined_call_operand.hbm [shape: f32[8,256], index: 2, kind: input, shape index: {}]   ;;  %s696_s3 = inlined_call_operand.vmem [shape: f32[8,256], index: 3, kind: input, shape index: {}]   ;;  %s697_s4 = inlined_call_operand.hbm [shape: f32[8,256], index: 4, kind: output, shape index: {}]  }
   0x1   :  { %10 = vsyncpa [#allocation6], 0 }
   0x2   :  { %11 = vsyncpa [#allocation4], 0  ;;  %s635_s15 = smov [#allocation2]   ;;  %s636_s17 = smov [#allocation5]  }
   0x3   :  { %s20_s16 = sshll.u32 %s635_s15, 4  ;;  %s30_s18 = sshll.u32 %s636_s17, 4  ;;  %s21_s16 = int_to_ptr.vmem [resolvable:$true] %s20_s16  ;;  %s31_s18 = int_to_ptr.vmem [resolvable:$true] %s30_s18 }
   0x4   :  { %s577_s19 = scalar_lea.vmem %s21_s16, 128  ;;  %p582_p1 = scmp.lt.s32.totalorder %s21_s16, %s21_s16 }
   0x5   :  { %p578_p0 = scmp.ne.s32.totalorder %s21_s16, %s577_s19  ;;  %p583_p2 = scmp.lt.s32.totalorder %s577_s19, %s577_s19 }
   0x7   :  { %p584_p3 = por %p583_p2, %p582_p1 }
   0x9   :  { %p585_p4 = pnand %p584_p3, %p578_p0 }
   0xb   :  { %588 = shalt.err (!%p585_p4)
}
   0xc   :  { %23 = dma.hbm_to_vmem [thread:$0]  %s694_s1, 128, %s21_s16, [#allocation3]  }
   0xd   :  { %s597_s22 = scalar_lea.vmem %s31_s18, 256  ;;  %p602_p6 = scmp.lt.s32.totalorder %s31_s18, %s31_s18 }
   0xe   :  { %p598_p5 = scmp.ne.s32.totalorder %s31_s18, %s597_s22  ;;  %p603_p7 = scmp.lt.s32.totalorder %s597_s22, %s597_s22 }
  0x10   :  { %p604_p8 = por %p603_p7, %p602_p6 }
  0x12   :  { %p605_p9 = pnand %p604_p8, %p598_p5 }
  0x14   :  { %608 = shalt.err (!%p605_p9)
}
  0x15   :  { %33 = dma.hbm_to_vmem [thread:$0]  %s695_s2, 256, %s31_s18, [#allocation6]  }
  0x16   :  { %629 = dma.done.wait [#allocation3], 128  }
  0x17   :  { %630 = vsyncadd [#allocation3], 4294967168 }
  0x18   :  { %631 = dma.done.wait [#allocation6], 256  }
  0x19   :  { %632 = vsyncadd [#allocation6], 4294967040  ;;  %v637_v0 = vmov 0   ;;  %v42_v1 = vld [vmem:[%s693_s0] sm:$0xff]  ;;  %v638_v2 = vmov 1   ;;  %v639_v3 = vmov 0.0  }
  0x1a   :  { %565 = vset.pattern.permute.xlu0 %v637_v0  ;;  %137 = vmatprep.mubr.f32.mxu0 %v639_v3  ;;  %v640_v4 = vmov 2   ;;  %v62_v5 = vld [vmem:[#allocation2] sm:$0xff]  ;;  %vm67_vm0 = vcmask 64512   ;;  %v43_v11 = vld [vmem:[#allocation5] sm:$0xff]  ;;  %v44_v12 = vld [vmem:[#allocation5 + $0x8] sm:$0xff] }
  0x1b   :  { %49 = vperm.xlu0 %565, %v42_v1   ;;  %223 = vmatprep.mubr.f32.mxu1 %v639_v3  ;;  %v69_v6 = vsel %vm67_vm0, %v62_v5, 0  ;;  %v679_v13 = vld [vmem:[%s696_s3] sm:$0xff]  ;;  %v684_v14 = vld [vmem:[%s696_s3 + $0x8] sm:$0xff]  ;;  %s641_s3 = smov [#allocation7]  }
  0x1c   :  { %567 = vset.pattern.permute.xlu1 %v640_v4  ;;  %v138_v7 = vand.u32 4294901760, %v69_v6  ;;  %s548_s28 = sshll.u32 %s641_s3, 4  ;;  %s549_s28 = int_to_ptr.vmem [resolvable:$true] %s548_s28 }
  0x1d   :  { %64 = vperm.xlu1 %567, %v42_v1   ;;  %s609_s29 = scalar_lea.vmem %s549_s28, 256  ;;  %p614_p11 = scmp.lt.s32.totalorder %s549_s28, %s549_s28 }
  0x1e   :  { %v139_v8 = vsub.f32 %v69_v6, %v138_v7  ;;  %p610_p10 = scmp.ne.s32.totalorder %s549_s28, %s609_s29  ;;  %p615_p12 = scmp.lt.s32.totalorder %s609_s29, %s609_s29 }
  0x1f   :  { %566 = vset.pattern.permute.xlu0 %v638_v2 }
  0x20   :  { %55 = vperm.xlu0 %566, %v42_v1   ;;  %v140_v10 = vand.u32 4294901760, %v139_v8  ;;  %p616_p13 = por %p615_p12, %p614_p11 }
  0x22   :  { %v141_v16 = vsub.f32 %v139_v8, %v140_v10  ;;  %p617_p0 = pnand %p616_p13, %p610_p10 }
  0x24   :  { %568 = vset.pattern.permute.xlu0 %v640_v4  ;;  %v142_v25 = vand.u32 4294901760, %v141_v16 }
  0x96   :  { %v50_v9 = vpop.permute.xlu0 %49 }
  0x97   :  { %v52_v17 = vmul.f32 %v50_v9, %v43_v11  ;;  %v53_v18 = vmul.f32 %v50_v9, %v44_v12 }
  0x98   :  { %v65_v35 = vpop.permute.xlu1 %64 }
  0x9b   :  { %v56_v15 = vpop.permute.xlu0 %55 }
  0x9c   :  { %v58_v19 = vmul.f32 %v56_v15, %v679_v13  ;;  %v59_v20 = vmul.f32 %v56_v15, %v684_v14 }
  0x9e   :  { %v60_v21 = vadd.f32 %v58_v19, %v52_v17  ;;  %v61_v22 = vadd.f32 %v59_v20, %v53_v18 }
  0xa0   :  { %v101_v23 = vand.u32 4294901760, %v61_v22  ;;  %v103_v24 = vand.u32 4294901760, %v60_v21 }
  0xa2   :  { %v186_v26 = vsub.f32 %v60_v21, %v103_v24  ;;  %102 = vmatprep.subr.mxu0 %v101_v23  ;;  %v180_v27 = vsub.f32 %v61_v22, %v101_v23 }
  0xa3   :  { %104 = vmatpush1.msra.mxu0 %v103_v24 }
  0xa4   :  { %143 = vmatmul.mubr.f32.vlgmr.msra.gmra.mxu0 %v142_v25  ;;  %263 = vmatprep.subr.mxu0 %v180_v27  ;;  %v181_v28 = vand.u32 4294901760, %v180_v27  ;;  %v187_v29 = vand.u32 4294901760, %v186_v26 }
  0xa5   :  { %266 = vmatpush1.msra.mxu0 %v186_v26  ;;  %299 = vmatprep.mubr.f32.mxu0 %v639_v3 }
  0xa6   :  { %417 = vmatprep.subr.mxu0 %v181_v28  ;;  %v182_v30 = vsub.f32 %v180_v27, %v181_v28  ;;  %v188_v31 = vsub.f32 %v186_v26, %v187_v29 }
  0xa8   :  { %302 = vmatmul.mubr.f32.vlgmr.msra.gmra.mxu0 %v139_v8  ;;  %v183_v32 = vand.u32 4294901760, %v182_v30  ;;  %v189_v33 = vand.u32 4294901760, %v188_v31 }
  0xa9   :  { %421 = vmatpush1.msra.mxu0 %v187_v29  ;;  %454 = vmatprep.mubr.f32.mxu0 %v639_v3 }
  0xaa   :  { %184 = vmatprep.subr.mxu1 %v183_v32 }
  0xab   :  { %190 = vmatpush1.msra.mxu1 %v189_v33 }
  0xac   :  { %225 = vmatmul.mubr.f32.vlgmr.msra.gmra.mxu1 %v138_v7  ;;  %339 = vmatprep.subr.mxu1 %v101_v23 }
  0xad   :  { %341 = vmatpush1.msra.mxu1 %v103_v24  ;;  %374 = vmatprep.mubr.f32.mxu1 %v639_v3 }
  0xae   :  { %493 = vmatprep.subr.mxu1 %v101_v23  ;;  %456 = vmatmul.mubr.f32.vlgmr.msra.gmra.mxu0 %v138_v7 }
  0xb0   :  { %378 = vmatmul.mubr.f32.vlgmr.msra.gmra.mxu1 %v140_v10 }
  0xb1   :  { %495 = vmatpush1.msra.mxu1 %v103_v24  ;;  %528 = vmatprep.mubr.f32.mxu1 %v639_v3 }
  0xb4   :  { %530 = vmatmul.mubr.f32.vlgmr.msra.gmra.mxu1 %v138_v7 }
 0x164   :  { %v144_v34 = vpop.f32.mrf.mxu0 }
 0x165   :  { %v145_v38 = vadd.f32 %v144_v34, %v65_v35 }
 0x166   :  { %v146_v36 = vpop.f32.mrf.mxu0 }
 0x167   :  { %v147_v41 = vadd.f32 %v146_v36, %v65_v35 }
 0x168   :  { %v303_v37 = vpop.f32.mrf.mxu0 }
 0x16a   :  { %v305_v40 = vpop.f32.mrf.mxu0 }
 0x16c   :  { %v226_v39 = vpop.f32.mrf.mxu1 }
 0x16d   :  { %v227_v42 = vadd.f32 %v226_v39, %v145_v38 }
 0x16e   :  { %v228_v43 = vpop.f32.mrf.mxu1  ;;  %v457_v47 = vpop.f32.mrf.mxu0 }
 0x16f   :  { %v304_v44 = vadd.f32 %v303_v37, %v227_v42  ;;  %v229_v45 = vadd.f32 %v228_v43, %v147_v41 }
 0x170   :  { %v379_v46 = vpop.f32.mrf.mxu1  ;;  %v459_v53 = vpop.f32.mrf.mxu0 }
 0x171   :  { %v306_v48 = vadd.f32 %v305_v40, %v229_v45  ;;  %v380_v49 = vadd.f32 %v379_v46, %v304_v44 }
 0x172   :  { %v381_v50 = vpop.f32.mrf.mxu1 }
 0x173   :  { %v458_v51 = vadd.f32 %v457_v47, %v380_v49  ;;  %v382_v52 = vadd.f32 %v381_v50, %v306_v48 }
 0x174   :  { %v531_v54 = vpop.f32.mrf.mxu1 }
 0x175   :  { %v460_v55 = vadd.f32 %v459_v53, %v382_v52  ;;  %v532_v56 = vadd.f32 %v531_v54, %v458_v51 }
 0x176   :  { %v533_v57 = vpop.f32.mrf.mxu1 }
 0x177   :  { %v536_v58 = vsub.f32 %v532_v56, %v679_v13  ;;  %v534_v59 = vadd.f32 %v533_v57, %v460_v55 }
 0x179   :  { %v538_v60 = vmul.f32 %v536_v58, %v536_v58  ;;  %v537_v61 = vsub.f32 %v534_v59, %v684_v14 }
 0x17b   :  { %540 = vst [vmem:[#allocation7] sm:$0xff] %v538_v60  ;;  %v539_v62 = vmul.f32 %v537_v61, %v537_v61 }
 0x17d   :  { %541 = vst [vmem:[#allocation7 + $0x8] sm:$0xff] %v539_v62 }
 0x17e   :  { %620 = shalt.err (!%p617_p0)
}
 0x17f   :  { %551 = dma.vmem_to_hbm [thread:$0]  %s549_s28, 256, %s697_s4, [#allocation4]  }
 0x180   :  { %633 = dma.done.wait [#allocation4], 256  }
 0x181   :  { %634 = vsyncadd [#allocation4], 4294967040 }
 0x182   :  { %555 = vsyncpa [#allocation3], 1 }
 0x183   :  { %556 = vsyncpa [#allocation6], 1 }
 0x184   :  { %557 = vsyncpa [#allocation4], 1 }

</bundles_post_ra>
